<compile_context>
chip_gen: v5e
topology: v5e:2x2
jax: 0.10.0
libtpu: 0.0.40
codegen_flags: <defaults>
</compile_context>

<pallas_src>
import jax
import jax.numpy as jnp
from jax import lax
from jax.experimental import pallas as pl
from jax.experimental.pallas import tpu as pltpu


def _mlp_kernel(x_ref, w1t_ref, b1_ref, w2t_ref, b2_ref, w3t_ref, b3_ref, ot_ref):
    # Whole hot path (3 matmuls + biases + 2 ReLUs) fused; batch stays on lanes.
    x = x_ref[...].astype(jnp.bfloat16)                                # (bt, 58)

    # Layer 1: h1_t[n, m] = sum_k w1t[n, k] * x[m, k]  -> (16, bt)
    h1_t = lax.dot_general(
        w1t_ref[...], x,
        dimension_numbers=(((1,), (1,)), ((), ())),
        preferred_element_type=jnp.float32,
    ) + b1_ref[...]
    h1_t = jnp.maximum(h1_t, 0.0)                                      # (16, bt) f32

    # Layer 2: h2_t = w2t @ h1_t  -> (16, bt)
    h2_t = lax.dot_general(
        w2t_ref[...], h1_t.astype(jnp.bfloat16),
        dimension_numbers=(((1,), (0,)), ((), ())),
        preferred_element_type=jnp.float32,
    ) + b2_ref[...]
    h2_t = jnp.maximum(h2_t, 0.0)                                      # (16, bt) f32

    # Layer 3: y_t = w3t @ h2_t  -> (2, bt), already lane-dense for the store.
    y_t = lax.dot_general(
        w3t_ref[...], h2_t.astype(jnp.bfloat16),
        dimension_numbers=(((1,), (0,)), ((), ())),
        preferred_element_type=jnp.float32,
    ) + b3_ref[...]

    ot_ref[...] = y_t.astype(ot_ref.dtype)


def news_fcnn_forward(x, params, *, batch_tile=8192):
    """x: (B, 58) float32.
    params (PyTorch layout): w1t (16,58), b1 (16,1), w2t (16,16), b2 (16,1),
                             w3t (2,16),  b3 (2,1).
    Returns (B, 2) float32 logits."""
    B, F = x.shape
    assert F == 58

    # Tile must be a multiple of 128 (lane-dense output); don't over-tile tiny batches.
    bt = max(128, (int(batch_tile) // 128) * 128)
    B_up = ((B + 127) // 128) * 128
    bt = min(bt, B_up)

    # v7x has 2 TensorCores per chip: split the batch axis across cores.  Requires the
    # grid to have >= 2 steps, so cap the tile accordingly.  No effect on v5e/v6e.
    kind = jax.devices()[0].device_kind.lower()
    dual_core = "v7" in kind
    if dual_core and B_up >= 256:
        half = ((B_up // 2 + 127) // 128) * 128
        bt = min(bt, max(128, half))

    grid_len = pl.cdiv(B, bt)
    use_core_parallel = dual_core and grid_len >= 2
    dim_sem = (pltpu.CORE_PARALLEL,) if use_core_parallel else ("parallel",)

    # Pre-cast weights to bf16 once (MXU-native on all generations); biases stay f32.
    w1t = params["w1t"].astype(jnp.bfloat16)
    w2t = params["w2t"].astype(jnp.bfloat16)
    w3t = params["w3t"].astype(jnp.bfloat16)
    b1, b2, b3 = params["b1"], params["b2"], params["b3"]

    def rep2(i):
        return (0, 0)

    flops = 2 * B * (58 * 16 + 16 * 16 + 16 * 2)
    bytes_accessed = (
        B * F * 4                                   # dominant stream: x read (f32)
        + B * 2 * 4                                 # logits write
        + (16 * 58 + 16 * 16 + 2 * 16) * 2          # bf16 weights (read once)
        + (16 + 16 + 2) * 4                         # f32 biases
    )

    out_t = pl.pallas_call(
        _mlp_kernel,
        out_shape=jax.ShapeDtypeStruct((2, B), jnp.float32),
        grid_spec=pltpu.PrefetchScalarGridSpec(
            num_scalar_prefetch=0,
            grid=(grid_len,),
            in_specs=[
                pl.BlockSpec((bt, F), lambda i: (i, 0)),   # x tile (58-wide in HBM)
                pl.BlockSpec(w1t.shape, rep2),             # resident weights/biases:
                pl.BlockSpec(b1.shape, rep2),              # constant (0,0) index maps,
                pl.BlockSpec(w2t.shape, rep2),             # not re-fetched per step
                pl.BlockSpec(b2.shape, rep2),
                pl.BlockSpec(w3t.shape, rep2),
                pl.BlockSpec(b3.shape, rep2),
            ],
            # Lane-dense output: batch on lanes -> unmasked full-width vst (boundary
            # block, if any, is masked by Pallas).
            out_specs=pl.BlockSpec((2, bt), lambda i: (0, i)),
        ),
        compiler_params=pltpu.CompilerParams(
            dimension_semantics=dim_sem,
            # bt=8192: x tile ~4 MiB lane-padded, x2 double-buffered, plus (16,bt)
            # intermediates -> well under 32 MiB on every generation incl. v7x.
            vmem_limit_bytes=32 * 1024 * 1024,
        ),
        cost_estimate=pl.CostEstimate(
            flops=flops, transcendentals=0, bytes_accessed=bytes_accessed
        ),
    )(x, w1t, b1, w2t, b2, w3t, b3)

    return out_t.T  # (B, 2)


def init_params(key):
    """Deterministic init matching nn.Linear's default U(-1/sqrt(fan_in), 1/sqrt(fan_in)).
    Weights kept in PyTorch (out_features, in_features) layout; biases as (out, 1)."""
    dims = [(58, 16), (16, 16), (16, 2)]
    params = {}
    for idx, (fan_in, fan_out) in enumerate(dims, start=1):
        key, kw, kb = jax.random.split(key, 3)
        bound = 1.0 / jnp.sqrt(fan_in)
        params[f"w{idx}t"] = jax.random.uniform(
            kw, (fan_out, fan_in), jnp.float32, -bound, bound
        )
        params[f"b{idx}"] = jax.random.uniform(
            kb, (fan_out, 1), jnp.float32, -bound, bound
        )
    return params


def _reference(x, p):
    # Pure-JAX f32 reference (same math as the PyTorch module).
    h1 = jnp.maximum(x @ p["w1t"].T + p["b1"].T, 0.0)
    h2 = jnp.maximum(h1 @ p["w2t"].T + p["b2"].T, 0.0)
    return h2 @ p["w3t"].T + p["b3"].T


if __name__ == "__main__":
    key = jax.random.PRNGKey(0)
    kp, kx1, kx2 = jax.random.split(key, 3)
    params = init_params(kp)

    # Small shapes consistent with the module: (batch, 58) tabular features.
    # Case 1: tiny batch (single partial tile).
    x_small = jax.random.normal(kx1, (8, 58), jnp.float32)
    out_small = jax.block_until_ready(news_fcnn_forward(x_small, params))
    ref_small = _reference(x_small, params)
    assert out_small.shape == (8, 2)
    # bf16 matmul operands with f32 accumulation -> relaxed tolerance vs f32 reference.
    assert jnp.allclose(out_small, ref_small, atol=5e-2, rtol=5e-2), "mismatch (small batch)"

    # Case 2: non-tile-multiple batch spanning multiple grid steps (exercises the
    # masked boundary block, no wrapper-side padding).
    x_big = jax.random.normal(kx2, (300, 58), jnp.float32)
    out_big = jax.block_until_ready(news_fcnn_forward(x_big, params, batch_tile=256))
    ref_big = _reference(x_big, params)
    assert out_big.shape == (300, 2)
    assert jnp.allclose(out_big, ref_big, atol=5e-2, rtol=5e-2), "mismatch (multi-tile batch)"

    print("KERNEL_OK")
</pallas_src>

<mosaic_0001>
module attributes {stable_mosaic.version = 11 : i64} {
  func.func @_mlp_kernel(%arg0: i32, %arg1: memref<128x58xf32, #tpu.memory_space<vmem>>, %arg2: memref<16x58xbf16, #tpu.memory_space<vmem>>, %arg3: memref<16x1xf32, #tpu.memory_space<vmem>>, %arg4: memref<16x16xbf16, #tpu.memory_space<vmem>>, %arg5: memref<16x1xf32, #tpu.memory_space<vmem>>, %arg6: memref<2x16xbf16, #tpu.memory_space<vmem>>, %arg7: memref<2x1xf32, #tpu.memory_space<vmem>>, %arg8: memref<2x128xf32, #tpu.memory_space<vmem>>) attributes {dimension_semantics = [#tpu.dimension_semantics<parallel>], iteration_bounds = array<i64: 1>, scalar_prefetch = 0 : i64, scratch_operands = 0 : i64, tpu.core_type = #tpu.core_type<tc>, window_params = [{transform_indices = @transform_0, window_bounds = array<i64: 128, 58>}, {pipeline_mode = #tpu.pipeline_mode<synchronous>, transform_indices = @transform_1, window_bounds = array<i64: 16, 58>}, {pipeline_mode = #tpu.pipeline_mode<synchronous>, transform_indices = @transform_2, window_bounds = array<i64: 16, 1>}, {pipeline_mode = #tpu.pipeline_mode<synchronous>, transform_indices = @transform_3, window_bounds = array<i64: 16, 16>}, {pipeline_mode = #tpu.pipeline_mode<synchronous>, transform_indices = @transform_4, window_bounds = array<i64: 16, 1>}, {pipeline_mode = #tpu.pipeline_mode<synchronous>, transform_indices = @transform_5, window_bounds = array<i64: 2, 16>}, {pipeline_mode = #tpu.pipeline_mode<synchronous>, transform_indices = @transform_6, window_bounds = array<i64: 2, 1>}, {transform_indices = @transform_7, window_bounds = array<i64: 2, 128>}]} {
    %c0 = arith.constant 0 : index
    %c0_0 = arith.constant 0 : index
    %0 = vector.load %arg1[%c0, %c0_0] : memref<128x58xf32, #tpu.memory_space<vmem>>, vector<128x58xf32>
    %1 = arith.truncf %0 : vector<128x58xf32> to vector<128x58xbf16>
    %c0_1 = arith.constant 0 : index
    %c0_2 = arith.constant 0 : index
    %2 = vector.load %arg2[%c0_1, %c0_2] : memref<16x58xbf16, #tpu.memory_space<vmem>>, vector<16x58xbf16>
    %cst = arith.constant dense<0.000000e+00> : vector<16x128xf32>
    %3 = tpu.matmul %2, %1, %cst {dimension_numbers = #tpu.dot_dimension_numbers<[1], [1], [0], [0], [0, 0, 1, 0], [], []>} : vector<16x58xbf16>, vector<128x58xbf16>, vector<16x128xf32> -> vector<16x128xf32>
    %c0_3 = arith.constant 0 : index
    %c0_4 = arith.constant 0 : index
    %4 = vector.load %arg3[%c0_3, %c0_4] : memref<16x1xf32, #tpu.memory_space<vmem>>, vector<16x1xf32>
    %5 = vector.broadcast %4 : vector<16x1xf32> to vector<16x128xf32>
    %6 = arith.addf %3, %5 : vector<16x128xf32>
    %cst_5 = arith.constant 0.000000e+00 : f32
    %7 = vector.broadcast %cst_5 : f32 to vector<16x128xf32>
    %8 = arith.maximumf %6, %7 : vector<16x128xf32>
    %c0_6 = arith.constant 0 : index
    %c0_7 = arith.constant 0 : index
    %9 = vector.load %arg4[%c0_6, %c0_7] : memref<16x16xbf16, #tpu.memory_space<vmem>>, vector<16x16xbf16>
    %10 = arith.truncf %8 : vector<16x128xf32> to vector<16x128xbf16>
    %cst_8 = arith.constant dense<0.000000e+00> : vector<16x128xf32>
    %11 = tpu.matmul %9, %10, %cst_8 {dimension_numbers = #tpu.dot_dimension_numbers<[1], [0], [0], [1], [0, 0, 1, 1], [], []>} : vector<16x16xbf16>, vector<16x128xbf16>, vector<16x128xf32> -> vector<16x128xf32>
    %c0_9 = arith.constant 0 : index
    %c0_10 = arith.constant 0 : index
    %12 = vector.load %arg5[%c0_9, %c0_10] : memref<16x1xf32, #tpu.memory_space<vmem>>, vector<16x1xf32>
    %13 = vector.broadcast %12 : vector<16x1xf32> to vector<16x128xf32>
    %14 = arith.addf %11, %13 : vector<16x128xf32>
    %cst_11 = arith.constant 0.000000e+00 : f32
    %15 = vector.broadcast %cst_11 : f32 to vector<16x128xf32>
    %16 = arith.maximumf %14, %15 : vector<16x128xf32>
    %c0_12 = arith.constant 0 : index
    %c0_13 = arith.constant 0 : index
    %17 = vector.load %arg6[%c0_12, %c0_13] : memref<2x16xbf16, #tpu.memory_space<vmem>>, vector<2x16xbf16>
    %18 = arith.truncf %16 : vector<16x128xf32> to vector<16x128xbf16>
    %cst_14 = arith.constant dense<0.000000e+00> : vector<2x128xf32>
    %19 = tpu.matmul %17, %18, %cst_14 {dimension_numbers = #tpu.dot_dimension_numbers<[1], [0], [0], [1], [0, 0, 1, 1], [], []>} : vector<2x16xbf16>, vector<16x128xbf16>, vector<2x128xf32> -> vector<2x128xf32>
    %c0_15 = arith.constant 0 : index
    %c0_16 = arith.constant 0 : index
    %20 = vector.load %arg7[%c0_15, %c0_16] : memref<2x1xf32, #tpu.memory_space<vmem>>, vector<2x1xf32>
    %21 = vector.broadcast %20 : vector<2x1xf32> to vector<2x128xf32>
    %22 = arith.addf %19, %21 : vector<2x128xf32>
    %c0_17 = arith.constant 0 : index
    %c0_18 = arith.constant 0 : index
    %23 = vector.load %arg8[%c0_17, %c0_18] : memref<2x128xf32, #tpu.memory_space<vmem>>, vector<2x128xf32>
    tpu.vector_store %arg8[%c0_17, %c0_18], %22 {strides = array<i32>} : memref<2x128xf32, #tpu.memory_space<vmem>>, vector<2x128xf32>,
    return
  }
  func.func @transform_0(%arg0: i32) -> (i32, i32) {
    %c0_i32 = arith.constant 0 : i32
    %c0_i32_0 = arith.constant 0 : i32
    return %arg0, %c0_i32 : i32, i32
  }
  func.func @transform_1(%arg0: i32) -> (i32, i32) {
    %c0_i32 = arith.constant 0 : i32
    %c0_i32_0 = arith.constant 0 : i32
    %c0_i32_1 = arith.constant 0 : i32
    return %c0_i32, %c0_i32_0 : i32, i32
  }
  func.func @transform_2(%arg0: i32) -> (i32, i32) {
    %c0_i32 = arith.constant 0 : i32
    %c0_i32_0 = arith.constant 0 : i32
    %c0_i32_1 = arith.constant 0 : i32
    return %c0_i32, %c0_i32_0 : i32, i32
  }
  func.func @transform_3(%arg0: i32) -> (i32, i32) {
    %c0_i32 = arith.constant 0 : i32
    %c0_i32_0 = arith.constant 0 : i32
    %c0_i32_1 = arith.constant 0 : i32
    return %c0_i32, %c0_i32_0 : i32, i32
  }
  func.func @transform_4(%arg0: i32) -> (i32, i32) {
    %c0_i32 = arith.constant 0 : i32
    %c0_i32_0 = arith.constant 0 : i32
    %c0_i32_1 = arith.constant 0 : i32
    return %c0_i32, %c0_i32_0 : i32, i32
  }
  func.func @transform_5(%arg0: i32) -> (i32, i32) {
    %c0_i32 = arith.constant 0 : i32
    %c0_i32_0 = arith.constant 0 : i32
    %c0_i32_1 = arith.constant 0 : i32
    return %c0_i32, %c0_i32_0 : i32, i32
  }
  func.func @transform_6(%arg0: i32) -> (i32, i32) {
    %c0_i32 = arith.constant 0 : i32
    %c0_i32_0 = arith.constant 0 : i32
    %c0_i32_1 = arith.constant 0 : i32
    return %c0_i32, %c0_i32_0 : i32, i32
  }
  func.func @transform_7(%arg0: i32) -> (i32, i32) {
    %c0_i32 = arith.constant 0 : i32
    %c0_i32_0 = arith.constant 0 : i32
    return %c0_i32, %arg0 : i32, i32
  }
}

</mosaic_0001>

<bundles_post_ra>
// kernel: tpu_custom_call.1
= control target key start
LH: loop header
LB: loop body
LE: loop exit
PB: predicated region body
PF: predicated region fallthrough
CT: control target
= control target key end

     0   :  { %vm71_vm0 = vcmask 474112   ;;  %s366_s0 = inlined_call_operand.vmem [shape: f32[8,58], index: 0, kind: input, shape index: {}]   ;;  %s367_s1 = inlined_call_operand.vmem [shape: bf16[16,58], index: 1, kind: input, shape index: {}]   ;;  %s368_s2 = inlined_call_operand.vmem [shape: f32[16,1], index: 2, kind: input, shape index: {}]   ;;  %s369_s3 = inlined_call_operand.vmem [shape: bf16[16,16], index: 3, kind: input, shape index: {}]   ;;  %s370_s4 = inlined_call_operand.vmem [shape: f32[16,1], index: 4, kind: input, shape index: {}]   ;;  %s371_s5 = inlined_call_operand.vmem [shape: bf16[2,16], index: 5, kind: input, shape index: {}]   ;;  %s372_s6 = inlined_call_operand.vmem [shape: f32[2,1], index: 6, kind: input, shape index: {}]   ;;  %s373_s7 = inlined_call_operand.hbm [shape: f32[2,8], index: 7, kind: output, shape index: {}]  }
   0x1   :  { %v42_v0 = vld [vmem:[%s366_s0 + $0x70] sm:$0xff]  ;;  %v43_v1 = vld [vmem:[%s366_s0 + $0x78] sm:$0xff]  ;;  %v40_v3 = vld [vmem:[%s366_s0 + $0x60] sm:$0xff] }
   0x2   :  { %v51_v2 = vpack.c.bf16 %v43_v1, %v42_v0  ;;  %v41_v4 = vld [vmem:[%s366_s0 + $0x68] sm:$0xff] }
   0x4   :  { %v97_v5 = vsel %vm71_vm0, %v51_v2, 0 }
   0x5   :  { %12 = vsyncpa [#allocation3], 0  ;;  %99 = vmatpush.bf16.xpose.msra.mxu0 %v97_v5  ;;  %v50_v6 = vpack.c.bf16 %v41_v4, %v40_v3  ;;  %v38_v8 = vld [vmem:[%s366_s0 + $0x50] sm:$0xff]  ;;  %v39_v9 = vld [vmem:[%s366_s0 + $0x58] sm:$0xff]  ;;  %v240_v23 = vmov 0   ;;  %vm135_vm1 = vcmask 130048  }
   0x6   :  { %v49_v10 = vpack.c.bf16 %v39_v9, %v38_v8  ;;  %v36_v12 = vld [vmem:[%s366_s0 + $0x40] sm:$0xff]  ;;  %v37_v13 = vld [vmem:[%s366_s0 + $0x48] sm:$0xff]  ;;  %v34_v16 = vld [vmem:[%s366_s0 + $0x30] sm:$0xff]  ;;  %211 = vset.pattern.permute.xlu0 %v240_v23  ;;  %212 = vset.pattern.permute.xlu1 %v240_v23  ;;  %s241_s21 = smov [#allocation2]   ;;  %s187_s24 = sshll.u32 %s373_s7, 4  ;;  %s188_s24 = int_to_ptr.hbm [resolvable:$true] %s187_s24 }
   0x7   :  { %v94_v7 = vsel %vm71_vm0, %v50_v6, 0  ;;  %v48_v14 = vpack.c.bf16 %v37_v13, %v36_v12  ;;  %v35_v17 = vld [vmem:[%s366_s0 + $0x38] sm:$0xff]  ;;  %v32_v20 = vld [vmem:[%s366_s0 + $0x20] sm:$0xff]  ;;  %v33_v21 = vld [vmem:[%s366_s0 + $0x28] sm:$0xff]  ;;  %213 = vset.pattern.permute.xlu2 %v240_v23  ;;  %s185_s22 = sshll.u32 %s241_s21, 4  ;;  %s186_s22 = int_to_ptr.vmem [resolvable:$true] %s185_s22 }
   0x8   :  { %v91_v11 = vsel %vm71_vm0, %v49_v10, 0  ;;  %v47_v18 = vpack.c.bf16 %v35_v17, %v34_v16  ;;  %v54_v22 = vld [vmem:[%s368_s2] sm:$0xff]  ;;  %v46_v24 = vpack.c.bf16 %v33_v21, %v32_v20  ;;  %v30_v26 = vld [vmem:[%s366_s0 + $0x10] sm:$0xff]  ;;  %v31_v27 = vld [vmem:[%s366_s0 + $0x18] sm:$0xff] }
   0x9   :  { %v88_v15 = vsel %vm71_vm0, %v48_v14, 0  ;;  %58 = vperm.xlu0 %211, %v54_v22   ;;  %v55_v28 = vld [vmem:[%s368_s2 + $0x8] sm:$0xff]  ;;  %v45_v29 = vpack.c.bf16 %v31_v27, %v30_v26  ;;  %v28_v31 = vld [vmem:[%s366_s0] sm:$0xff] }
   0xa   :  { %v85_v19 = vsel %vm71_vm0, %v47_v18, 0  ;;  %v82_v25 = vsel %vm71_vm0, %v46_v24, 0  ;;  %v29_v32 = vld [vmem:[%s366_s0 + $0x8] sm:$0xff]  ;;  %v207_v35 = vld [vmem:[%s367_s1] sm:$0xff] }
   0xb   :  { %v79_v30 = vsel %vm71_vm0, %v45_v29, 0  ;;  %v44_v33 = vpack.c.bf16 %v29_v32, %v28_v31  ;;  %v118_v36 = vld [vmem:[%s370_s4] sm:$0xff]  ;;  %v119_v37 = vld [vmem:[%s370_s4 + $0x8] sm:$0xff] }
   0xc   :  { %122 = vperm.xlu1 %212, %v118_v36   ;;  %v208_v47 = vld [vmem:[%s369_s3] sm:$0xff] }
   0xd   :  { %100 = vmatpush.bf16.xpose.msra.mxu0 %v94_v7  ;;  %v76_v34 = vsel %vm71_vm0, %v44_v33, 0  ;;  %v157_v48 = vld [vmem:[%s372_s6] sm:$0x3] }
   0xe   :  { %160 = vperm.xlu2 %213, %v157_v48   ;;  %v155_v58 = vld [vmem:[%s371_s5] sm:$0x1] }
  0x11   :  { %63 = vperm.xlu0 %211, %v55_v28  }
  0x14   :  { %127 = vperm.xlu1 %212, %v119_v37  }
  0x15   :  { %101 = vmatpush.bf16.xpose.msra.mxu0 %v91_v11 }
  0x1d   :  { %102 = vmatpush.bf16.xpose.msra.mxu0 %v88_v15 }
  0x25   :  { %103 = vmatpush.bf16.xpose.msra.mxu0 %v85_v19 }
  0x2d   :  { %104 = vmatpush.bf16.xpose.msra.mxu0 %v82_v25 }
  0x35   :  { %105 = vmatpush.bf16.xpose.msra.mxu0 %v79_v30 }
  0x3d   :  { %106 = vmatpush.bf16.xpose.msra.mxu0 %v76_v34 }
  0x44   :  { %200 = vmatmul.msk.bf16.vlgmr.msra.gmra.mxu0 %vm71_vm0, %v207_v35 }
  0x68   :  { %v161_v59 = vpop.permute.xlu2 %160 }
  0x7b   :  { %v59_v38 = vpop.permute.xlu0 %58 }
  0x7e   :  { %v123_v49 = vpop.permute.xlu1 %122 }
  0x83   :  { %v64_v41 = vpop.permute.xlu0 %63 }
  0x86   :  { %v128_v52 = vpop.permute.xlu1 %127 }
  0xc1   :  { %v108_v39 = vpop.f32.mrf.mxu0 }
  0xc2   :  { %v109_v40 = vadd.f32 %v108_v39, %v59_v38 }
  0xc4   :  { %v113_v44 = vmax.f32 %v109_v40, 0.0 }
  0xc9   :  { %v110_v42 = vpop.f32.mrf.mxu0 }
  0xca   :  { %v111_v43 = vadd.f32 %v110_v42, %v64_v41 }
  0xcc   :  { %v114_v45 = vmax.f32 %v111_v43, 0.0 }
  0xce   :  { %v117_v46 = vpack.c.bf16 %v114_v45, %v113_v44 }
  0xd0   :  { %146 = vmatpush.bf16.msra.mxu1 %v117_v46 }
  0xd3   :  { %205 = vmatmul.msk.bf16.vlgmr.msra.gmra.mxu1 %vm135_vm1, %v208_v47 }
 0x150   :  { %v148_v50 = vpop.f32.mrf.mxu1 }
 0x151   :  { %v149_v51 = vadd.f32 %v148_v50, %v123_v49 }
 0x153   :  { %v153_v55 = vmax.f32 %v149_v51, 0.0 }
 0x158   :  { %v150_v53 = vpop.f32.mrf.mxu1 }
 0x159   :  { %v151_v54 = vadd.f32 %v150_v53, %v128_v52 }
 0x15b   :  { %v154_v56 = vmax.f32 %v151_v54, 0.0 }
 0x15d   :  { %v156_v57 = vpack.c.bf16 %v154_v56, %v153_v55 }
 0x15f   :  { %173 = vmatpush.bf16.msra.mxu2 %v156_v57 }
 0x162   :  { %206 = vmatmul.msk.bf16.vlgmr.msra.gmra.mxu2 %vm135_vm1, %v155_v58 }
 0x1e5   :  { %v175_v60 = vpop.f32.mrf.mxu2 }
 0x1e6   :  { %v176_v61 = vadd.f32 %v175_v60, %v161_v59 }
 0x1e8   :  { %179 = vst [vmem:[#allocation2] sm:$0x3] %v176_v61 }
 0x1e9   :  { %190 = dma.vmem_to_hbm [thread:$0]  %s186_s22, 32, %s188_s24, [#allocation3]  }
 0x1ed   :  { %v177_v62 = vpop.f32.mrf.mxu2 }
 0x1ee   :  { %238 = dma.done.wait [#allocation3], 32  }
 0x1ef   :  { %239 = vsyncadd [#allocation3], 4294967264 }
 0x1f0   :  { %195 = vsyncpa [#allocation3], 1 }

</bundles_post_ra>
